<compile_context>
chip_gen: v6e
topology: v6e:2x2x1
jax: 0.10.0
libtpu: 0.0.40
codegen_flags: <defaults>
</compile_context>

<pallas_src>
import jax
import jax.numpy as jnp
from jax.experimental import pallas as pl
from jax.experimental.pallas import tpu as pltpu

LAMBDA_COORD = 10.0
LAMBDA_NOOBJ = 0.25
S = 7
B = 2
C = 20
EPS = 1e-6


def _round_up(x, m):
  return ((x + m - 1) // m) * m


def _iou(px, py, pw, ph, gx, gy, gw, gh):
  """Center-format IoU, shape-agnostic elementwise."""
  p_x1, p_x2 = px - pw * 0.5, px + pw * 0.5
  p_y1, p_y2 = py - ph * 0.5, py + ph * 0.5
  g_x1, g_x2 = gx - gw * 0.5, gx + gw * 0.5
  g_y1, g_y2 = gy - gh * 0.5, gy + gh * 0.5
  iw = jnp.maximum(jnp.minimum(p_x2, g_x2) - jnp.maximum(p_x1, g_x1), 0.0)
  ih = jnp.maximum(jnp.minimum(p_y2, g_y2) - jnp.maximum(p_y1, g_y1), 0.0)
  inter = iw * ih
  area_p = (p_x2 - p_x1) * (p_y2 - p_y1)
  area_g = (g_x2 - g_x1) * (g_y2 - g_y1)
  return inter / (area_p + area_g - inter + EPS)


def yolo_loss_kernel(pred_ref, gt_ref, out_ref):
  """pred_ref, gt_ref: (B*5+C, TILE) blocks (features x cells, lane-dense).

  out_ref: (8, 128) per-tile partials; lane 0 = box loss sum, lane 1 = class-CE
  numerator, lane 2 = object-cell count (all rows identical).
  """

  def prow(i):
    return pred_ref[i:i + 1, :].astype(jnp.float32)   # (1, TILE) lane-dense

  def grow(i):
    return gt_ref[i:i + 1, :].astype(jnp.float32)

  # ---- pass 1: per-box IoU + best-box selection (only IoUs stay live) ----
  ious = []
  for b in range(B):
    o = 5 * b
    ious.append(_iou(prow(o + 0), prow(o + 1), prow(o + 2), prow(o + 3),
                     grow(o + 0), grow(o + 1), grow(o + 2), grow(o + 3)))

  best = jnp.zeros_like(ious[0], dtype=jnp.int32)
  best_iou = ious[0]
  for b in range(1, B):
    take = ious[b] > best_iou
    best = jnp.where(take, jnp.int32(b), best)
    best_iou = jnp.where(take, ious[b], best_iou)

  # ---- pass 2: fused per-cell box loss (coord + obj-conf + noobj-conf) ---
  cell_loss = jnp.zeros_like(best_iou)
  any_obj = jnp.zeros(best_iou.shape, dtype=jnp.bool_)
  for b in range(B):
    o = 5 * b
    gc = grow(o + 4)
    pc = prow(o + 4)
    has_obj = gc > 0.0
    any_obj = jnp.logical_or(any_obj, has_obj)
    objf = jnp.logical_and(best == b, has_obj).astype(jnp.float32)
    noobjf = (gc == 0.0).astype(jnp.float32)

    coord = (prow(o + 0) - grow(o + 0)) ** 2 + (prow(o + 1) - grow(o + 1)) ** 2
    # torch.clamp(min=1e-6) before sqrt.
    coord += (jnp.sqrt(jnp.maximum(prow(o + 2), EPS))
              - jnp.sqrt(jnp.maximum(grow(o + 2), EPS))) ** 2
    coord += (jnp.sqrt(jnp.maximum(prow(o + 3), EPS))
              - jnp.sqrt(jnp.maximum(grow(o + 3), EPS))) ** 2

    cell_loss += (objf * (LAMBDA_COORD * coord + (pc - gc) ** 2)
                  + LAMBDA_NOOBJ * noobjf * (pc * pc))

  # ---- classification: softmax CE over cells with an object -------------
  pcls = pred_ref[B * 5:, :].astype(jnp.float32)   # (C, TILE)
  gcls = gt_ref[B * 5:, :].astype(jnp.float32)
  rows_f = jax.lax.broadcasted_iota(jnp.int32, pcls.shape, 0).astype(jnp.float32)
  gmax = jnp.max(gcls, axis=0, keepdims=True)
  is_max = gcls == gmax
  tgt = jnp.min(jnp.where(is_max, rows_f, jnp.float32(C)), axis=0, keepdims=True)
  onehot = (rows_f == tgt).astype(jnp.float32)

  m = jnp.max(pcls, axis=0, keepdims=True)
  lse = m + jnp.log(jnp.sum(jnp.exp(pcls - m), axis=0, keepdims=True))
  ce_row = lse - jnp.sum(onehot * pcls, axis=0, keepdims=True)   # (1, TILE)

  objcell = any_obj.astype(jnp.float32)

  # ---- three fused cross-lane reductions -> per-tile partials -----------
  box_sum = jnp.sum(cell_loss, axis=1, keepdims=True)            # (1, 1)
  cls_num = jnp.sum(objcell * ce_row, axis=1, keepdims=True)     # (1, 1)
  cls_cnt = jnp.sum(objcell, axis=1, keepdims=True)              # (1, 1)

  lane = jax.lax.broadcasted_iota(jnp.int32, (8, 128), 1)
  out_ref[...] = (jnp.where(lane == 0, box_sum, 0.0)
                  + jnp.where(lane == 1, cls_num, 0.0)
                  + jnp.where(lane == 2, cls_cnt, 0.0))


def yolo_loss(pred, gt, *, tile=1024):
  """pred, gt: (N, S, S, B*5 + C) -> scalar loss (float32)."""
  feat = B * 5 + C
  pred4 = pred.reshape(-1, S, S, feat)
  batch = pred4.shape[0]
  R = batch * S * S

  tile = max(128, _round_up(int(tile), 128))
  tile = min(tile, _round_up(R, 128))
  r_pad = _round_up(R, tile)
  num_tiles = r_pad // tile

  flat_p = pred4.reshape(R, feat)
  flat_g = gt.reshape(R, feat)
  if r_pad != R:
    # Zero-padded cells contribute exactly zero to every partial sum.
    pad = ((0, r_pad - R), (0, 0))
    flat_p = jnp.pad(flat_p, pad)
    flat_g = jnp.pad(flat_g, pad)

  # Lane-dense layout: features along sublanes, grid cells along lanes.
  # Native dtype is kept (upcast to f32 happens per row inside the kernel).
  p_t = flat_p.T   # (feat, r_pad)
  g_t = flat_g.T

  partials = pl.pallas_call(
      yolo_loss_kernel,
      out_shape=jax.ShapeDtypeStruct((num_tiles * 8, 128), jnp.float32),
      grid_spec=pltpu.PrefetchScalarGridSpec(
          num_scalar_prefetch=0,
          grid=(num_tiles,),
          in_specs=[
              pl.BlockSpec((feat, tile), lambda i: (0, i)),
              pl.BlockSpec((feat, tile), lambda i: (0, i)),
          ],
          out_specs=pl.BlockSpec((8, 128), lambda i: (i, 0)),
      ),
      compiler_params=pltpu.CompilerParams(
          dimension_semantics=("parallel",),
          vmem_limit_bytes=32 * 1024 * 1024,
      ),
  )(p_t, g_t)

  part = partials.reshape(num_tiles, 8, 128)[:, 0, :]   # (num_tiles, 128)
  box_sum = jnp.sum(part[:, 0])
  cls_num = jnp.sum(part[:, 1])
  cls_cnt = jnp.sum(part[:, 2])
  class_loss = cls_num / cls_cnt   # NaN iff no object cell (matches torch CE).
  return (box_sum + class_loss) / jnp.float32(batch)


def yolo_loss_ref(pred, gt):
  """Pure-JAX reference (row-major layout, independent of the kernel path)."""
  feat = B * 5 + C
  pred4 = pred.reshape(-1, S, S, feat)
  batch = pred4.shape[0]
  p = pred4.reshape(-1, feat).astype(jnp.float32)
  g = gt.reshape(-1, feat).astype(jnp.float32)

  def col(x, j):
    return x[:, j:j + 1]

  ious, comps = [], []
  for b in range(B):
    o = b * 5
    px, py, pw, ph, pc = (col(p, o + k) for k in range(5))
    gx, gy, gw, gh, gc = (col(g, o + k) for k in range(5))
    ious.append(_iou(px, py, pw, ph, gx, gy, gw, gh))
    comps.append((px, py, pw, ph, pc, gx, gy, gw, gh, gc))

  best = jnp.zeros_like(ious[0], dtype=jnp.int32)
  best_iou = ious[0]
  for b in range(1, B):
    take = ious[b] > best_iou
    best = jnp.where(take, jnp.int32(b), best)
    best_iou = jnp.where(take, ious[b], best_iou)

  xy = wh = objc = noobjc = 0.0
  any_obj = jnp.zeros_like(ious[0], dtype=jnp.bool_)
  for b in range(B):
    px, py, pw, ph, pc, gx, gy, gw, gh, gc = comps[b]
    has_obj = gc > 0.0
    any_obj = jnp.logical_or(any_obj, has_obj)
    objf = jnp.logical_and(best == b, has_obj).astype(jnp.float32)
    noobjf = (gc == 0.0).astype(jnp.float32)
    xy += jnp.sum(objf * ((px - gx) ** 2 + (py - gy) ** 2))
    spw = jnp.sqrt(jnp.maximum(pw, EPS)); sph = jnp.sqrt(jnp.maximum(ph, EPS))
    sgw = jnp.sqrt(jnp.maximum(gw, EPS)); sgh = jnp.sqrt(jnp.maximum(gh, EPS))
    wh += jnp.sum(objf * ((spw - sgw) ** 2 + (sph - sgh) ** 2))
    objc += jnp.sum(objf * (pc - gc) ** 2)
    noobjc += jnp.sum(noobjf * pc * pc)

  loc = LAMBDA_COORD * (xy + wh)
  conf = objc + LAMBDA_NOOBJ * noobjc

  pcls = p[:, B * 5:]
  gcls = g[:, B * 5:]
  lane = jax.lax.broadcasted_iota(jnp.int32, pcls.shape, 1)
  is_max = gcls == jnp.max(gcls, axis=-1, keepdims=True)
  tgt = jnp.min(jnp.where(is_max, lane, C), axis=-1, keepdims=True)
  onehot = (lane == tgt).astype(jnp.float32)
  m = jnp.max(pcls, axis=-1, keepdims=True)
  lse = m + jnp.log(jnp.sum(jnp.exp(pcls - m), axis=-1, keepdims=True))
  ce = lse - jnp.sum(onehot * pcls, axis=-1, keepdims=True)
  objcell = any_obj.astype(jnp.float32)
  cls = jnp.sum(objcell * ce) / jnp.sum(objcell)
  return (loc + conf + cls) / jnp.float32(batch)


if __name__ == "__main__":
  N = 4
  feat = B * 5 + C  # 30
  key = jax.random.PRNGKey(0)
  k1, k2, k3 = jax.random.split(key, 3)

  pred = jax.random.normal(k1, (N, S, S, feat), jnp.float32)
  gt = jax.random.uniform(k2, (N, S, S, feat), jnp.float32)
  # Mix of zero / positive confidences to exercise obj & noobj paths.
  conf_keep = jax.random.uniform(k3, (N, S, S, B)) > 0.5
  gt = gt.at[..., 4].set(jnp.where(conf_keep[..., 0], gt[..., 4], 0.0))
  gt = gt.at[..., 9].set(jnp.where(conf_keep[..., 1], gt[..., 9], 0.0))

  # tile=128 forces a multi-tile grid (R = 196 -> 2 tiles) to exercise the
  # tiled / partial-sum path at small shapes.
  loss = jax.block_until_ready(yolo_loss(pred, gt, tile=128))
  ref = jax.block_until_ready(yolo_loss_ref(pred, gt))

  assert jnp.isfinite(loss), "loss is not finite"
  assert jnp.allclose(loss, ref, rtol=1e-4, atol=1e-4), (loss, ref)

  # Also exercise the default (single-tile here) path.
  loss2 = jax.block_until_ready(yolo_loss(pred, gt))
  assert jnp.allclose(loss2, ref, rtol=1e-4, atol=1e-4), (loss2, ref)
  print("KERNEL_OK")
</pallas_src>

<mosaic_0001>
module attributes {stable_mosaic.version = 11 : i64} {
  func.func @yolo_loss_kernel(%arg0: i32, %arg1: memref<30x128xf32, #tpu.memory_space<vmem>>, %arg2: memref<30x128xf32, #tpu.memory_space<vmem>>, %arg3: memref<8x128xf32, #tpu.memory_space<vmem>>) attributes {dimension_semantics = [#tpu.dimension_semantics<parallel>], iteration_bounds = array<i64: 2>, scalar_prefetch = 0 : i64, scratch_operands = 0 : i64, tpu.core_type = #tpu.core_type<tc>, window_params = [{transform_indices = @transform_0, window_bounds = array<i64: 30, 128>}, {transform_indices = @transform_1, window_bounds = array<i64: 30, 128>}, {transform_indices = @transform_2, window_bounds = array<i64: 8, 128>}]} {
    %c0 = arith.constant 0 : index
    %c0_0 = arith.constant 0 : index
    %0 = vector.load %arg1[%c0, %c0_0] : memref<30x128xf32, #tpu.memory_space<vmem>>, vector<1x128xf32>
    %c1 = arith.constant 1 : index
    %c0_1 = arith.constant 0 : index
    %1 = vector.load %arg1[%c1, %c0_1] : memref<30x128xf32, #tpu.memory_space<vmem>>, vector<1x128xf32>
    %c2 = arith.constant 2 : index
    %c0_2 = arith.constant 0 : index
    %2 = vector.load %arg1[%c2, %c0_2] : memref<30x128xf32, #tpu.memory_space<vmem>>, vector<1x128xf32>
    %c3 = arith.constant 3 : index
    %c0_3 = arith.constant 0 : index
    %3 = vector.load %arg1[%c3, %c0_3] : memref<30x128xf32, #tpu.memory_space<vmem>>, vector<1x128xf32>
    %c0_4 = arith.constant 0 : index
    %c0_5 = arith.constant 0 : index
    %4 = vector.load %arg2[%c0_4, %c0_5] : memref<30x128xf32, #tpu.memory_space<vmem>>, vector<1x128xf32>
    %c1_6 = arith.constant 1 : index
    %c0_7 = arith.constant 0 : index
    %5 = vector.load %arg2[%c1_6, %c0_7] : memref<30x128xf32, #tpu.memory_space<vmem>>, vector<1x128xf32>
    %c2_8 = arith.constant 2 : index
    %c0_9 = arith.constant 0 : index
    %6 = vector.load %arg2[%c2_8, %c0_9] : memref<30x128xf32, #tpu.memory_space<vmem>>, vector<1x128xf32>
    %c3_10 = arith.constant 3 : index
    %c0_11 = arith.constant 0 : index
    %7 = vector.load %arg2[%c3_10, %c0_11] : memref<30x128xf32, #tpu.memory_space<vmem>>, vector<1x128xf32>
    %cst = arith.constant 5.000000e-01 : f32
    %8 = vector.broadcast %cst : f32 to vector<1x128xf32>
    %9 = arith.mulf %2, %8 : vector<1x128xf32>
    %10 = arith.subf %0, %9 : vector<1x128xf32>
    %cst_12 = arith.constant 5.000000e-01 : f32
    %11 = vector.broadcast %cst_12 : f32 to vector<1x128xf32>
    %12 = arith.mulf %2, %11 : vector<1x128xf32>
    %13 = arith.addf %0, %12 : vector<1x128xf32>
    %cst_13 = arith.constant 5.000000e-01 : f32
    %14 = vector.broadcast %cst_13 : f32 to vector<1x128xf32>
    %15 = arith.mulf %3, %14 : vector<1x128xf32>
    %16 = arith.subf %1, %15 : vector<1x128xf32>
    %cst_14 = arith.constant 5.000000e-01 : f32
    %17 = vector.broadcast %cst_14 : f32 to vector<1x128xf32>
    %18 = arith.mulf %3, %17 : vector<1x128xf32>
    %19 = arith.addf %1, %18 : vector<1x128xf32>
    %cst_15 = arith.constant 5.000000e-01 : f32
    %20 = vector.broadcast %cst_15 : f32 to vector<1x128xf32>
    %21 = arith.mulf %6, %20 : vector<1x128xf32>
    %22 = arith.subf %4, %21 : vector<1x128xf32>
    %cst_16 = arith.constant 5.000000e-01 : f32
    %23 = vector.broadcast %cst_16 : f32 to vector<1x128xf32>
    %24 = arith.mulf %6, %23 : vector<1x128xf32>
    %25 = arith.addf %4, %24 : vector<1x128xf32>
    %cst_17 = arith.constant 5.000000e-01 : f32
    %26 = vector.broadcast %cst_17 : f32 to vector<1x128xf32>
    %27 = arith.mulf %7, %26 : vector<1x128xf32>
    %28 = arith.subf %5, %27 : vector<1x128xf32>
    %cst_18 = arith.constant 5.000000e-01 : f32
    %29 = vector.broadcast %cst_18 : f32 to vector<1x128xf32>
    %30 = arith.mulf %7, %29 : vector<1x128xf32>
    %31 = arith.addf %5, %30 : vector<1x128xf32>
    %32 = arith.minimumf %13, %25 : vector<1x128xf32>
    %33 = arith.maximumf %10, %22 : vector<1x128xf32>
    %34 = arith.subf %32, %33 : vector<1x128xf32>
    %cst_19 = arith.constant 0.000000e+00 : f32
    %35 = vector.broadcast %cst_19 : f32 to vector<1x128xf32>
    %36 = arith.maximumf %34, %35 : vector<1x128xf32>
    %37 = arith.minimumf %19, %31 : vector<1x128xf32>
    %38 = arith.maximumf %16, %28 : vector<1x128xf32>
    %39 = arith.subf %37, %38 : vector<1x128xf32>
    %cst_20 = arith.constant 0.000000e+00 : f32
    %40 = vector.broadcast %cst_20 : f32 to vector<1x128xf32>
    %41 = arith.maximumf %39, %40 : vector<1x128xf32>
    %42 = arith.mulf %36, %41 : vector<1x128xf32>
    %43 = arith.subf %13, %10 : vector<1x128xf32>
    %44 = arith.subf %19, %16 : vector<1x128xf32>
    %45 = arith.mulf %43, %44 : vector<1x128xf32>
    %46 = arith.subf %25, %22 : vector<1x128xf32>
    %47 = arith.subf %31, %28 : vector<1x128xf32>
    %48 = arith.mulf %46, %47 : vector<1x128xf32>
    %49 = arith.addf %45, %48 : vector<1x128xf32>
    %50 = arith.subf %49, %42 : vector<1x128xf32>
    %cst_21 = arith.constant 9.99999997E-7 : f32
    %51 = vector.broadcast %cst_21 : f32 to vector<1x128xf32>
    %52 = arith.addf %50, %51 : vector<1x128xf32>
    %53 = arith.divf %42, %52 : vector<1x128xf32>
    %c5 = arith.constant 5 : index
    %c0_22 = arith.constant 0 : index
    %54 = vector.load %arg1[%c5, %c0_22] : memref<30x128xf32, #tpu.memory_space<vmem>>, vector<1x128xf32>
    %c6 = arith.constant 6 : index
    %c0_23 = arith.constant 0 : index
    %55 = vector.load %arg1[%c6, %c0_23] : memref<30x128xf32, #tpu.memory_space<vmem>>, vector<1x128xf32>
    %c7 = arith.constant 7 : index
    %c0_24 = arith.constant 0 : index
    %56 = vector.load %arg1[%c7, %c0_24] : memref<30x128xf32, #tpu.memory_space<vmem>>, vector<1x128xf32>
    %c8 = arith.constant 8 : index
    %c0_25 = arith.constant 0 : index
    %57 = vector.load %arg1[%c8, %c0_25] : memref<30x128xf32, #tpu.memory_space<vmem>>, vector<1x128xf32>
    %c5_26 = arith.constant 5 : index
    %c0_27 = arith.constant 0 : index
    %58 = vector.load %arg2[%c5_26, %c0_27] : memref<30x128xf32, #tpu.memory_space<vmem>>, vector<1x128xf32>
    %c6_28 = arith.constant 6 : index
    %c0_29 = arith.constant 0 : index
    %59 = vector.load %arg2[%c6_28, %c0_29] : memref<30x128xf32, #tpu.memory_space<vmem>>, vector<1x128xf32>
    %c7_30 = arith.constant 7 : index
    %c0_31 = arith.constant 0 : index
    %60 = vector.load %arg2[%c7_30, %c0_31] : memref<30x128xf32, #tpu.memory_space<vmem>>, vector<1x128xf32>
    %c8_32 = arith.constant 8 : index
    %c0_33 = arith.constant 0 : index
    %61 = vector.load %arg2[%c8_32, %c0_33] : memref<30x128xf32, #tpu.memory_space<vmem>>, vector<1x128xf32>
    %cst_34 = arith.constant 5.000000e-01 : f32
    %62 = vector.broadcast %cst_34 : f32 to vector<1x128xf32>
    %63 = arith.mulf %56, %62 : vector<1x128xf32>
    %64 = arith.subf %54, %63 : vector<1x128xf32>
    %cst_35 = arith.constant 5.000000e-01 : f32
    %65 = vector.broadcast %cst_35 : f32 to vector<1x128xf32>
    %66 = arith.mulf %56, %65 : vector<1x128xf32>
    %67 = arith.addf %54, %66 : vector<1x128xf32>
    %cst_36 = arith.constant 5.000000e-01 : f32
    %68 = vector.broadcast %cst_36 : f32 to vector<1x128xf32>
    %69 = arith.mulf %57, %68 : vector<1x128xf32>
    %70 = arith.subf %55, %69 : vector<1x128xf32>
    %cst_37 = arith.constant 5.000000e-01 : f32
    %71 = vector.broadcast %cst_37 : f32 to vector<1x128xf32>
    %72 = arith.mulf %57, %71 : vector<1x128xf32>
    %73 = arith.addf %55, %72 : vector<1x128xf32>
    %cst_38 = arith.constant 5.000000e-01 : f32
    %74 = vector.broadcast %cst_38 : f32 to vector<1x128xf32>
    %75 = arith.mulf %60, %74 : vector<1x128xf32>
    %76 = arith.subf %58, %75 : vector<1x128xf32>
    %cst_39 = arith.constant 5.000000e-01 : f32
    %77 = vector.broadcast %cst_39 : f32 to vector<1x128xf32>
    %78 = arith.mulf %60, %77 : vector<1x128xf32>
    %79 = arith.addf %58, %78 : vector<1x128xf32>
    %cst_40 = arith.constant 5.000000e-01 : f32
    %80 = vector.broadcast %cst_40 : f32 to vector<1x128xf32>
    %81 = arith.mulf %61, %80 : vector<1x128xf32>
    %82 = arith.subf %59, %81 : vector<1x128xf32>
    %cst_41 = arith.constant 5.000000e-01 : f32
    %83 = vector.broadcast %cst_41 : f32 to vector<1x128xf32>
    %84 = arith.mulf %61, %83 : vector<1x128xf32>
    %85 = arith.addf %59, %84 : vector<1x128xf32>
    %86 = arith.minimumf %67, %79 : vector<1x128xf32>
    %87 = arith.maximumf %64, %76 : vector<1x128xf32>
    %88 = arith.subf %86, %87 : vector<1x128xf32>
    %cst_42 = arith.constant 0.000000e+00 : f32
    %89 = vector.broadcast %cst_42 : f32 to vector<1x128xf32>
    %90 = arith.maximumf %88, %89 : vector<1x128xf32>
    %91 = arith.minimumf %73, %85 : vector<1x128xf32>
    %92 = arith.maximumf %70, %82 : vector<1x128xf32>
    %93 = arith.subf %91, %92 : vector<1x128xf32>
    %cst_43 = arith.constant 0.000000e+00 : f32
    %94 = vector.broadcast %cst_43 : f32 to vector<1x128xf32>
    %95 = arith.maximumf %93, %94 : vector<1x128xf32>
    %96 = arith.mulf %90, %95 : vector<1x128xf32>
    %97 = arith.subf %67, %64 : vector<1x128xf32>
    %98 = arith.subf %73, %70 : vector<1x128xf32>
    %99 = arith.mulf %97, %98 : vector<1x128xf32>
    %100 = arith.subf %79, %76 : vector<1x128xf32>
    %101 = arith.subf %85, %82 : vector<1x128xf32>
    %102 = arith.mulf %100, %101 : vector<1x128xf32>
    %103 = arith.addf %99, %102 : vector<1x128xf32>
    %104 = arith.subf %103, %96 : vector<1x128xf32>
    %cst_44 = arith.constant 9.99999997E-7 : f32
    %105 = vector.broadcast %cst_44 : f32 to vector<1x128xf32>
    %106 = arith.addf %104, %105 : vector<1x128xf32>
    %107 = arith.divf %96, %106 : vector<1x128xf32>
    %c0_i32 = arith.constant 0 : i32
    %108 = vector.broadcast %c0_i32 : i32 to vector<1x128xi32>
    %109 = arith.cmpf ogt, %107, %53 : vector<1x128xf32>
    %c1_i32 = arith.constant 1 : i32
    %110 = vector.broadcast %c1_i32 : i32 to vector<1x128xi32>
    %111 = arith.select %109, %110, %108 : vector<1x128xi1>, vector<1x128xi32>
    %cst_45 = arith.constant 0.000000e+00 : f32
    %112 = vector.broadcast %cst_45 : f32 to vector<1x128xf32>
    %false = arith.constant false
    %113 = vector.broadcast %false : i1 to vector<1x128xi1>
    %c4 = arith.constant 4 : index
    %c0_46 = arith.constant 0 : index
    %114 = vector.load %arg2[%c4, %c0_46] : memref<30x128xf32, #tpu.memory_space<vmem>>, vector<1x128xf32>
    %c4_47 = arith.constant 4 : index
    %c0_48 = arith.constant 0 : index
    %115 = vector.load %arg1[%c4_47, %c0_48] : memref<30x128xf32, #tpu.memory_space<vmem>>, vector<1x128xf32>
    %cst_49 = arith.constant 0.000000e+00 : f32
    %116 = vector.broadcast %cst_49 : f32 to vector<1x128xf32>
    %117 = arith.cmpf ogt, %114, %116 : vector<1x128xf32>
    %118 = arith.ori %113, %117 : vector<1x128xi1>
    %c0_i32_50 = arith.constant 0 : i32
    %119 = vector.broadcast %c0_i32_50 : i32 to vector<1x128xi32>
    %120 = arith.cmpi eq, %111, %119 : vector<1x128xi32>
    %121 = arith.andi %120, %117 : vector<1x128xi1>
    %122 = arith.extui %121 : vector<1x128xi1> to vector<1x128xi32>
    %123 = arith.sitofp %122 : vector<1x128xi32> to vector<1x128xf32>
    %cst_51 = arith.constant 0.000000e+00 : f32
    %124 = vector.broadcast %cst_51 : f32 to vector<1x128xf32>
    %125 = arith.cmpf oeq, %114, %124 : vector<1x128xf32>
    %126 = arith.extui %125 : vector<1x128xi1> to vector<1x128xi32>
    %127 = arith.sitofp %126 : vector<1x128xi32> to vector<1x128xf32>
    %c0_52 = arith.constant 0 : index
    %c0_53 = arith.constant 0 : index
    %128 = vector.load %arg1[%c0_52, %c0_53] : memref<30x128xf32, #tpu.memory_space<vmem>>, vector<1x128xf32>
    %c0_54 = arith.constant 0 : index
    %c0_55 = arith.constant 0 : index
    %129 = vector.load %arg2[%c0_54, %c0_55] : memref<30x128xf32, #tpu.memory_space<vmem>>, vector<1x128xf32>
    %130 = arith.subf %128, %129 : vector<1x128xf32>
    %131 = arith.mulf %130, %130 : vector<1x128xf32>
    %c1_56 = arith.constant 1 : index
    %c0_57 = arith.constant 0 : index
    %132 = vector.load %arg1[%c1_56, %c0_57] : memref<30x128xf32, #tpu.memory_space<vmem>>, vector<1x128xf32>
    %c1_58 = arith.constant 1 : index
    %c0_59 = arith.constant 0 : index
    %133 = vector.load %arg2[%c1_58, %c0_59] : memref<30x128xf32, #tpu.memory_space<vmem>>, vector<1x128xf32>
    %134 = arith.subf %132, %133 : vector<1x128xf32>
    %135 = arith.mulf %134, %134 : vector<1x128xf32>
    %136 = arith.addf %131, %135 : vector<1x128xf32>
    %c2_60 = arith.constant 2 : index
    %c0_61 = arith.constant 0 : index
    %137 = vector.load %arg1[%c2_60, %c0_61] : memref<30x128xf32, #tpu.memory_space<vmem>>, vector<1x128xf32>
    %cst_62 = arith.constant 9.99999997E-7 : f32
    %138 = vector.broadcast %cst_62 : f32 to vector<1x128xf32>
    %139 = arith.maximumf %137, %138 : vector<1x128xf32>
    %140 = math.sqrt %139 : vector<1x128xf32>
    %c2_63 = arith.constant 2 : index
    %c0_64 = arith.constant 0 : index
    %141 = vector.load %arg2[%c2_63, %c0_64] : memref<30x128xf32, #tpu.memory_space<vmem>>, vector<1x128xf32>
    %cst_65 = arith.constant 9.99999997E-7 : f32
    %142 = vector.broadcast %cst_65 : f32 to vector<1x128xf32>
    %143 = arith.maximumf %141, %142 : vector<1x128xf32>
    %144 = math.sqrt %143 : vector<1x128xf32>
    %145 = arith.subf %140, %144 : vector<1x128xf32>
    %146 = arith.mulf %145, %145 : vector<1x128xf32>
    %147 = arith.addf %136, %146 : vector<1x128xf32>
    %c3_66 = arith.constant 3 : index
    %c0_67 = arith.constant 0 : index
    %148 = vector.load %arg1[%c3_66, %c0_67] : memref<30x128xf32, #tpu.memory_space<vmem>>, vector<1x128xf32>
    %cst_68 = arith.constant 9.99999997E-7 : f32
    %149 = vector.broadcast %cst_68 : f32 to vector<1x128xf32>
    %150 = arith.maximumf %148, %149 : vector<1x128xf32>
    %151 = math.sqrt %150 : vector<1x128xf32>
    %c3_69 = arith.constant 3 : index
    %c0_70 = arith.constant 0 : index
    %152 = vector.load %arg2[%c3_69, %c0_70] : memref<30x128xf32, #tpu.memory_space<vmem>>, vector<1x128xf32>
    %cst_71 = arith.constant 9.99999997E-7 : f32
    %153 = vector.broadcast %cst_71 : f32 to vector<1x128xf32>
    %154 = arith.maximumf %152, %153 : vector<1x128xf32>
    %155 = math.sqrt %154 : vector<1x128xf32>
    %156 = arith.subf %151, %155 : vector<1x128xf32>
    %157 = arith.mulf %156, %156 : vector<1x128xf32>
    %158 = arith.addf %147, %157 : vector<1x128xf32>
    %cst_72 = arith.constant 1.000000e+01 : f32
    %159 = vector.broadcast %cst_72 : f32 to vector<1x128xf32>
    %160 = arith.mulf %159, %158 : vector<1x128xf32>
    %161 = arith.subf %115, %114 : vector<1x128xf32>
    %162 = arith.mulf %161, %161 : vector<1x128xf32>
    %163 = arith.addf %160, %162 : vector<1x128xf32>
    %164 = arith.mulf %123, %163 : vector<1x128xf32>
    %cst_73 = arith.constant 2.500000e-01 : f32
    %165 = vector.broadcast %cst_73 : f32 to vector<1x128xf32>
    %166 = arith.mulf %165, %127 : vector<1x128xf32>
    %167 = arith.mulf %115, %115 : vector<1x128xf32>
    %168 = arith.mulf %166, %167 : vector<1x128xf32>
    %169 = arith.addf %164, %168 : vector<1x128xf32>
    %170 = arith.addf %112, %169 : vector<1x128xf32>
    %c9 = arith.constant 9 : index
    %c0_74 = arith.constant 0 : index
    %171 = vector.load %arg2[%c9, %c0_74] : memref<30x128xf32, #tpu.memory_space<vmem>>, vector<1x128xf32>
    %c9_75 = arith.constant 9 : index
    %c0_76 = arith.constant 0 : index
    %172 = vector.load %arg1[%c9_75, %c0_76] : memref<30x128xf32, #tpu.memory_space<vmem>>, vector<1x128xf32>
    %cst_77 = arith.constant 0.000000e+00 : f32
    %173 = vector.broadcast %cst_77 : f32 to vector<1x128xf32>
    %174 = arith.cmpf ogt, %171, %173 : vector<1x128xf32>
    %175 = arith.ori %118, %174 : vector<1x128xi1>
    %c1_i32_78 = arith.constant 1 : i32
    %176 = vector.broadcast %c1_i32_78 : i32 to vector<1x128xi32>
    %177 = arith.cmpi eq, %111, %176 : vector<1x128xi32>
    %178 = arith.andi %177, %174 : vector<1x128xi1>
    %179 = arith.extui %178 : vector<1x128xi1> to vector<1x128xi32>
    %180 = arith.sitofp %179 : vector<1x128xi32> to vector<1x128xf32>
    %cst_79 = arith.constant 0.000000e+00 : f32
    %181 = vector.broadcast %cst_79 : f32 to vector<1x128xf32>
    %182 = arith.cmpf oeq, %171, %181 : vector<1x128xf32>
    %183 = arith.extui %182 : vector<1x128xi1> to vector<1x128xi32>
    %184 = arith.sitofp %183 : vector<1x128xi32> to vector<1x128xf32>
    %c5_80 = arith.constant 5 : index
    %c0_81 = arith.constant 0 : index
    %185 = vector.load %arg1[%c5_80, %c0_81] : memref<30x128xf32, #tpu.memory_space<vmem>>, vector<1x128xf32>
    %c5_82 = arith.constant 5 : index
    %c0_83 = arith.constant 0 : index
    %186 = vector.load %arg2[%c5_82, %c0_83] : memref<30x128xf32, #tpu.memory_space<vmem>>, vector<1x128xf32>
    %187 = arith.subf %185, %186 : vector<1x128xf32>
    %188 = arith.mulf %187, %187 : vector<1x128xf32>
    %c6_84 = arith.constant 6 : index
    %c0_85 = arith.constant 0 : index
    %189 = vector.load %arg1[%c6_84, %c0_85] : memref<30x128xf32, #tpu.memory_space<vmem>>, vector<1x128xf32>
    %c6_86 = arith.constant 6 : index
    %c0_87 = arith.constant 0 : index
    %190 = vector.load %arg2[%c6_86, %c0_87] : memref<30x128xf32, #tpu.memory_space<vmem>>, vector<1x128xf32>
    %191 = arith.subf %189, %190 : vector<1x128xf32>
    %192 = arith.mulf %191, %191 : vector<1x128xf32>
    %193 = arith.addf %188, %192 : vector<1x128xf32>
    %c7_88 = arith.constant 7 : index
    %c0_89 = arith.constant 0 : index
    %194 = vector.load %arg1[%c7_88, %c0_89] : memref<30x128xf32, #tpu.memory_space<vmem>>, vector<1x128xf32>
    %cst_90 = arith.constant 9.99999997E-7 : f32
    %195 = vector.broadcast %cst_90 : f32 to vector<1x128xf32>
    %196 = arith.maximumf %194, %195 : vector<1x128xf32>
    %197 = math.sqrt %196 : vector<1x128xf32>
    %c7_91 = arith.constant 7 : index
    %c0_92 = arith.constant 0 : index
    %198 = vector.load %arg2[%c7_91, %c0_92] : memref<30x128xf32, #tpu.memory_space<vmem>>, vector<1x128xf32>
    %cst_93 = arith.constant 9.99999997E-7 : f32
    %199 = vector.broadcast %cst_93 : f32 to vector<1x128xf32>
    %200 = arith.maximumf %198, %199 : vector<1x128xf32>
    %201 = math.sqrt %200 : vector<1x128xf32>
    %202 = arith.subf %197, %201 : vector<1x128xf32>
    %203 = arith.mulf %202, %202 : vector<1x128xf32>
    %204 = arith.addf %193, %203 : vector<1x128xf32>
    %c8_94 = arith.constant 8 : index
    %c0_95 = arith.constant 0 : index
    %205 = vector.load %arg1[%c8_94, %c0_95] : memref<30x128xf32, #tpu.memory_space<vmem>>, vector<1x128xf32>
    %cst_96 = arith.constant 9.99999997E-7 : f32
    %206 = vector.broadcast %cst_96 : f32 to vector<1x128xf32>
    %207 = arith.maximumf %205, %206 : vector<1x128xf32>
    %208 = math.sqrt %207 : vector<1x128xf32>
    %c8_97 = arith.constant 8 : index
    %c0_98 = arith.constant 0 : index
    %209 = vector.load %arg2[%c8_97, %c0_98] : memref<30x128xf32, #tpu.memory_space<vmem>>, vector<1x128xf32>
    %cst_99 = arith.constant 9.99999997E-7 : f32
    %210 = vector.broadcast %cst_99 : f32 to vector<1x128xf32>
    %211 = arith.maximumf %209, %210 : vector<1x128xf32>
    %212 = math.sqrt %211 : vector<1x128xf32>
    %213 = arith.subf %208, %212 : vector<1x128xf32>
    %214 = arith.mulf %213, %213 : vector<1x128xf32>
    %215 = arith.addf %204, %214 : vector<1x128xf32>
    %cst_100 = arith.constant 1.000000e+01 : f32
    %216 = vector.broadcast %cst_100 : f32 to vector<1x128xf32>
    %217 = arith.mulf %216, %215 : vector<1x128xf32>
    %218 = arith.subf %172, %171 : vector<1x128xf32>
    %219 = arith.mulf %218, %218 : vector<1x128xf32>
    %220 = arith.addf %217, %219 : vector<1x128xf32>
    %221 = arith.mulf %180, %220 : vector<1x128xf32>
    %cst_101 = arith.constant 2.500000e-01 : f32
    %222 = vector.broadcast %cst_101 : f32 to vector<1x128xf32>
    %223 = arith.mulf %222, %184 : vector<1x128xf32>
    %224 = arith.mulf %172, %172 : vector<1x128xf32>
    %225 = arith.mulf %223, %224 : vector<1x128xf32>
    %226 = arith.addf %221, %225 : vector<1x128xf32>
    %227 = arith.addf %170, %226 : vector<1x128xf32>
    %c10 = arith.constant 10 : index
    %c0_102 = arith.constant 0 : index
    %228 = vector.load %arg1[%c10, %c0_102] : memref<30x128xf32, #tpu.memory_space<vmem>>, vector<20x128xf32>
    %c10_103 = arith.constant 10 : index
    %c0_104 = arith.constant 0 : index
    %229 = vector.load %arg2[%c10_103, %c0_104] : memref<30x128xf32, #tpu.memory_space<vmem>>, vector<20x128xf32>
    %230 = tpu.iota {dimensions = array<i32: 0>} : vector<20x128xi32>
    %231 = arith.sitofp %230 : vector<20x128xi32> to vector<20x128xf32>
    %cst_105 = arith.constant dense<0xFF800000> : vector<128xf32>
    %232 = vector.multi_reduction <maximumf>, %229, %cst_105 [0] : vector<20x128xf32> to vector<128xf32>
    %233 = vector.shape_cast %232 : vector<128xf32> to vector<1x128xf32>
    %234 = vector.broadcast %233 : vector<1x128xf32> to vector<20x128xf32>
    %235 = arith.cmpf oeq, %229, %234 : vector<20x128xf32>
    %cst_106 = arith.constant 2.000000e+01 : f32
    %236 = vector.broadcast %cst_106 : f32 to vector<20x128xf32>
    %237 = arith.select %235, %231, %236 : vector<20x128xi1>, vector<20x128xf32>
    %cst_107 = arith.constant dense<0x7F800000> : vector<128xf32>
    %238 = vector.multi_reduction <minimumf>, %237, %cst_107 [0] : vector<20x128xf32> to vector<128xf32>
    %239 = vector.shape_cast %238 : vector<128xf32> to vector<1x128xf32>
    %240 = vector.broadcast %239 : vector<1x128xf32> to vector<20x128xf32>
    %241 = arith.cmpf oeq, %231, %240 : vector<20x128xf32>
    %242 = arith.extui %241 : vector<20x128xi1> to vector<20x128xi32>
    %243 = arith.sitofp %242 : vector<20x128xi32> to vector<20x128xf32>
    %cst_108 = arith.constant dense<0xFF800000> : vector<128xf32>
    %244 = vector.multi_reduction <maximumf>, %228, %cst_108 [0] : vector<20x128xf32> to vector<128xf32>
    %245 = vector.shape_cast %244 : vector<128xf32> to vector<1x128xf32>
    %246 = vector.broadcast %245 : vector<1x128xf32> to vector<20x128xf32>
    %247 = arith.subf %228, %246 : vector<20x128xf32>
    %248 = math.exp %247 : vector<20x128xf32>
    %cst_109 = arith.constant dense<0.000000e+00> : vector<128xf32>
    %249 = vector.multi_reduction <add>, %248, %cst_109 [0] : vector<20x128xf32> to vector<128xf32>
    %250 = vector.shape_cast %249 : vector<128xf32> to vector<1x128xf32>
    %251 = math.log %250 : vector<1x128xf32>
    %252 = arith.addf %245, %251 : vector<1x128xf32>
    %253 = arith.mulf %243, %228 : vector<20x128xf32>
    %cst_110 = arith.constant dense<0.000000e+00> : vector<128xf32>
    %254 = vector.multi_reduction <add>, %253, %cst_110 [0] : vector<20x128xf32> to vector<128xf32>
    %255 = vector.shape_cast %254 : vector<128xf32> to vector<1x128xf32>
    %256 = arith.subf %252, %255 : vector<1x128xf32>
    %257 = arith.extui %175 : vector<1x128xi1> to vector<1x128xi32>
    %258 = arith.sitofp %257 : vector<1x128xi32> to vector<1x128xf32>
    %cst_111 = arith.constant dense<0.000000e+00> : vector<1xf32>
    %259 = vector.multi_reduction <add>, %227, %cst_111 [1] : vector<1x128xf32> to vector<1xf32>
    %260 = vector.shape_cast %259 : vector<1xf32> to vector<1x1xf32>
    %261 = arith.mulf %258, %256 : vector<1x128xf32>
    %cst_112 = arith.constant dense<0.000000e+00> : vector<1xf32>
    %262 = vector.multi_reduction <add>, %261, %cst_112 [1] : vector<1x128xf32> to vector<1xf32>
    %263 = vector.shape_cast %262 : vector<1xf32> to vector<1x1xf32>
    %cst_113 = arith.constant dense<0.000000e+00> : vector<1xf32>
    %264 = vector.multi_reduction <add>, %258, %cst_113 [1] : vector<1x128xf32> to vector<1xf32>
    %265 = vector.shape_cast %264 : vector<1xf32> to vector<1x1xf32>
    %266 = tpu.iota {dimensions = array<i32: 1>} : vector<8x128xi32>
    %c0_i32_114 = arith.constant 0 : i32
    %267 = vector.broadcast %c0_i32_114 : i32 to vector<8x128xi32>
    %268 = arith.cmpi eq, %266, %267 : vector<8x128xi32>
    %cst_115 = arith.constant 0.000000e+00 : f32
    %269 = vector.shape_cast %260 : vector<1x1xf32> to vector<1x1xf32>
    %270 = vector.broadcast %269 : vector<1x1xf32> to vector<8x128xf32>
    %271 = vector.broadcast %cst_115 : f32 to vector<8x128xf32>
    %272 = arith.select %268, %270, %271 : vector<8x128xi1>, vector<8x128xf32>
    %c1_i32_116 = arith.constant 1 : i32
    %273 = vector.broadcast %c1_i32_116 : i32 to vector<8x128xi32>
    %274 = arith.cmpi eq, %266, %273 : vector<8x128xi32>
    %cst_117 = arith.constant 0.000000e+00 : f32
    %275 = vector.shape_cast %263 : vector<1x1xf32> to vector<1x1xf32>
    %276 = vector.broadcast %275 : vector<1x1xf32> to vector<8x128xf32>
    %277 = vector.broadcast %cst_117 : f32 to vector<8x128xf32>
    %278 = arith.select %274, %276, %277 : vector<8x128xi1>, vector<8x128xf32>
    %279 = arith.addf %272, %278 : vector<8x128xf32>
    %c2_i32 = arith.constant 2 : i32
    %280 = vector.broadcast %c2_i32 : i32 to vector<8x128xi32>
    %281 = arith.cmpi eq, %266, %280 : vector<8x128xi32>
    %cst_118 = arith.constant 0.000000e+00 : f32
    %282 = vector.shape_cast %265 : vector<1x1xf32> to vector<1x1xf32>
    %283 = vector.broadcast %282 : vector<1x1xf32> to vector<8x128xf32>
    %284 = vector.broadcast %cst_118 : f32 to vector<8x128xf32>
    %285 = arith.select %281, %283, %284 : vector<8x128xi1>, vector<8x128xf32>
    %286 = arith.addf %279, %285 : vector<8x128xf32>
    %c0_119 = arith.constant 0 : index
    %c0_120 = arith.constant 0 : index
    %287 = vector.load %arg3[%c0_119, %c0_120] : memref<8x128xf32, #tpu.memory_space<vmem>>, vector<8x128xf32>
    tpu.vector_store %arg3[%c0_119, %c0_120], %286 {strides = array<i32>} : memref<8x128xf32, #tpu.memory_space<vmem>>, vector<8x128xf32>,
    return
  }
  func.func @transform_0(%arg0: i32) -> (i32, i32) {
    %c0_i32 = arith.constant 0 : i32
    %c0_i32_0 = arith.constant 0 : i32
    return %c0_i32, %arg0 : i32, i32
  }
  func.func @transform_1(%arg0: i32) -> (i32, i32) {
    %c0_i32 = arith.constant 0 : i32
    %c0_i32_0 = arith.constant 0 : i32
    return %c0_i32, %arg0 : i32, i32
  }
  func.func @transform_2(%arg0: i32) -> (i32, i32) {
    %c0_i32 = arith.constant 0 : i32
    %c0_i32_0 = arith.constant 0 : i32
    return %arg0, %c0_i32 : i32, i32
  }
}

</mosaic_0001>

<bundles_post_ra>
// kernel: tpu_custom_call.1
= control target key start
LH: loop header
LB: loop body
LE: loop exit
PB: predicated region body
PF: predicated region fallthrough
CT: control target
= control target key end

     0   :  { %7 = vsyncpa [#allocation3], 0  ;;  %s1434_s0 = inlined_call_operand.hbm [shape: f32[30,256], index: 0, kind: input, shape index: {}]   ;;  %s1435_s1 = inlined_call_operand.hbm [shape: f32[30,256], index: 1, kind: input, shape index: {}]   ;;  %s1436_s2 = inlined_call_operand.hbm [shape: f32[16,128], index: 2, kind: output, shape index: {}]  }
   0x1   :  { %9 = vsyncpa [#allocation3 + $0x1], 0 }
   0x2   :  { %10 = vsyncpa [#allocation6], 0 }
   0x3   :  { %12 = vsyncpa [#allocation6 + $0x1], 0 }
   0x4   :  { %13 = vsyncpa [#allocation4], 0 }
   0x5   :  { %15 = vsyncpa [#allocation4 + $0x1], 0  ;;  %s897_s9 = smov 0   ;;  %s899_s10 = smov 0  }
   0x6   :  { %s901_s11 = smov 0   ;;  %s903_s12 = smov 0  }
   0x7 LB: > { %s918_s13 = sadd.s32 4294967295, %s873_s12   ;;  %s642_s14 = sadd.s32 4294967294, %s873_s12   ;;  %s873_s12 = sphi %s903_s12, %s1455_s12   ;;  %s869_s11 = sphi %s901_s11, %s1454_s11   ;;  %s865_s10 = sphi %s899_s10, %s1453_s10   ;;  %s861_s9 = sphi %s897_s9, %s1452_s9  }
   0x8   : > { %s922_s15 = sadd.s32 1, %s873_s12   ;;  %s28_s16 = sadd.s32 1, %s869_s11 }
   0x9   : > { %s25_s17 = ssub.s32 %s873_s12, %s922_s15  ;;  %p35_p0 = scmp.ne.s32.totalorder %s869_s11, %s865_s10 }
   0xa   : > { %p26_p1 = scmp.eq.s32.totalorder %s25_s17, 0  ;;  %p36_p2 = scmp.eq.s32.totalorder %s873_s12, 0 }
   0xb   : > { %p41_p3 = scmp.ne.s32.totalorder %s865_s10, %s861_s9  ;;  %p42_p4 = scmp.eq.s32.totalorder %s918_s13, 0 }
   0xc   : > { %s934_s18 = scalar_select %p26_p1, %s869_s11, %s28_s16  }
   0xd   : > { %p936_p5 = por %p36_p2, %p35_p0  ;;  %p940_p6 = por %p42_p4, %p41_p3 }
   0xe   : > { %p91_p7 = scmp.eq.s32.totalorder %s918_s13, 1  ;;  %p97_p8 = scmp.eq.s32.totalorder %s642_s14, 1 }
   0xf   : > { %s1440_s20 = scalar_select %p940_p6, 1, 0 }
  0x10   : > { %p683_p10 = scmp.lt.s32.totalorder %s873_s12, 2  ;;  %p947_p11 = por %p91_p7, %p35_p0 }
  0x11   : > { %p951_p12 = por %p97_p8, %p41_p3  ;;  %s956_s23 = sand.u32 1, %s869_s11  }
  0x12   : > { %s1441_s21 = scalar_select %p947_p11, 1, 0 }
  0x13   : > { %s1442_s22 = scalar_select %p951_p12, 1, 0 }
  0x14   : > { %s646_s24 = sshll.u32 %s873_s12, 7  ;;  %s645_s25 = sshll.u32 %s956_s23, 5 }
  0x15   : > { %s965_s28 = scalar_lea.hbm %s1434_s0, %s646_s24  ;;  %s121_s29 = scalar_lea.vmem [#allocation2], %s645_s25 }
  0x16   : > { %s127_s30 = sshll.u32 %s121_s29, 4  ;;  %p971_p13 = pnand %p683_p10, %p936_p5  ;;  %s975_s30 = int_to_ptr.vmem [resolvable:$true] %s127_s30 }
  0x17   : > { %s118_s4 = scalar_lea.sflag [#allocation3], %s956_s23  ;;  %s749_s5 = scalar_lea.hbm %s965_s28, 512 }
  0x18   : > { %p750_p1 = scmp.ne.s32.totalorder %s965_s28, %s749_s5  ;;  %p751_p2 = pneg %p971_p13 }
  0x19   : > { %s754_s8 = scalar_lea.hbm %s1434_s0, 1024  ;;  %p755_p5 = scmp.lt.s32.totalorder %s965_s28, %s1434_s0 }
  0x1a   : > { %p752_p3 = pnand %p751_p2, %p750_p1  ;;  %p756_p7 = scmp.lt.s32.totalorder %s754_s8, %s749_s5 }
  0x1c   : > { %p753_p4 = pneg %p752_p3  ;;  %p757_p8 = por %p756_p7, %p755_p5 }
  0x1e   : > { %p758_p10 = pnand %p757_p8, %p753_p4 }
  0x20   : > { %761 = shalt.err (!%p758_p10)
}
  0x21   : > { %s762_s17 = scalar_lea.vmem %s975_s30, 512  ;;  %s875_s19 = smov [#allocation2]  }
  0x22   : > { %p763_p9 = scmp.ne.s32.totalorder %s975_s30, %s762_s17  ;;  %s767_s26 = sshll.u32 %s875_s19, 4  ;;  %s768_s26 = int_to_ptr.vmem [resolvable:$false] %s767_s26 }
  0x23   : > { %s769_s27 = scalar_lea.vmem %s768_s26, 1024  ;;  %p770_p0 = scmp.lt.s32.totalorder %s975_s30, %s768_s26 }
  0x24   : > { %p765_p1 = pnand %p763_p9, %p751_p2  ;;  %p771_p12 = scmp.lt.s32.totalorder %s769_s27, %s762_s17 }
  0x26   : > { %p766_p3 = pneg %p765_p1  ;;  %p772_p11 = por %p771_p12, %p770_p0 }
  0x28   : > { %p773_p5 = pnand %p772_p11, %p766_p3 }
  0x2a   : > { %776 = shalt.err (!%p773_p5)
}
  0x2b   : > { %s876_s29 = smov 256   ;;  %s877_s5 = smov 128  }
  0x2c   : > { %s878_s6 = smov 8   ;;  %p155_p9 = scmp.lt.s32.totalorder %s873_s12, 3 }
  0x2d   : > { %675 = dma.hbm_to_vmem [thread:$0]  (!%p971_p13), %s965_s28, 512, %s975_s30, %s118_s4, %s876_s29, %s877_s5, %s878_s6  }
  0x2e   : > { %s1014_s14 = scalar_lea.hbm %s1435_s1, %s646_s24  ;;  %p1444_p11 = scmp.ge.s32.totalorder %s873_s12, 1 }
  0x2f   : > { %s141_s17 = scalar_lea.vmem [#allocation5], %s645_s25  ;;  %s138_s28 = scalar_lea.sflag [#allocation6], %s956_s23 }
  0x30   : > { %p1018_p12 = pnand %p1444_p11, %p155_p9  ;;  %s147_s19 = sshll.u32 %s141_s17, 4  ;;  %s1024_s19 = int_to_ptr.vmem [resolvable:$true] %s147_s19 }
  0x31   : > { %s777_s30 = scalar_lea.hbm %s1014_s14, 512  ;;  %s782_s26 = scalar_lea.hbm %s1435_s1, 1024 }
  0x32   : > { %p778_p0 = scmp.ne.s32.totalorder %s1014_s14, %s777_s30  ;;  %p783_p8 = scmp.lt.s32.totalorder %s1014_s14, %s1435_s1 }
  0x33   : > { %p784_p10 = scmp.lt.s32.totalorder %s782_s26, %s777_s30 }
  0x34   : > { %p780_p4 = pnand %p778_p0, %p751_p2 }
  0x35   : > { %p785_p1 = por %p784_p10, %p783_p8 }
  0x36   : > { %p781_p7 = pneg %p780_p4 }
  0x38   : > { %p786_p3 = pnand %p785_p1, %p781_p7 }
  0x3a   : > { %789 = shalt.err (!%p786_p3)
}
  0x3b   : > { %s790_s23 = scalar_lea.vmem %s1024_s19, 512  ;;  %s879_s25 = smov [#allocation5]  }
  0x3c   : > { %p791_p5 = scmp.ne.s32.totalorder %s1024_s19, %s790_s23  ;;  %s795_s8 = sshll.u32 %s879_s25, 4  ;;  %s796_s8 = int_to_ptr.vmem [resolvable:$false] %s795_s8 }
  0x3d   : > { %s797_s17 = scalar_lea.vmem %s796_s8, 1024  ;;  %p798_p0 = scmp.lt.s32.totalorder %s1024_s19, %s796_s8 }
  0x3e   : > { %p793_p9 = pnand %p791_p5, %p751_p2  ;;  %p799_p4 = scmp.lt.s32.totalorder %s797_s17, %s790_s23 }
  0x40   : > { %p794_p11 = pneg %p793_p9  ;;  %p800_p6 = por %p799_p4, %p798_p0 }
  0x42   : > { %p801_p8 = pnand %p800_p6, %p794_p11 }
  0x44   : > { %804 = shalt.err (!%p801_p8)
}
  0x45   : > { %678 = dma.hbm_to_vmem [thread:$0]  (!%p971_p13), %s1014_s14, 512, %s1024_s19, %s138_s28, %s876_s29, %s877_s5, %s878_s6  }
  0x46   : > { %159 = sbr.rel (%p1018_p12) target bundleno = 348 (0x15c), region = 28  ;;  %s1055_s30 = sand.u32 (!%p1018_p12), 1, %s865_s10  }
  0x47   : > { %s650_s24 = sshll.u32 (!%p1018_p12), %s1055_s30, 5  ;;  %s162_s4 = scalar_lea.sflag (!%p1018_p12), [#allocation3], %s1055_s30 }
  0x48   : > { %s1059_s26 = scalar_lea.vmem (!%p1018_p12), [#allocation2], %s650_s24  ;;  %p1446_p6 = scmp.ne.s32.totalorder (!%p1018_p12), %s1440_s20, 0 }
  0x4b   : > { %848 = dma.done.wait (%p1446_p6), %s162_s4, 512  }
  0x4c   : > { %850 = vsyncadd (%p1446_p6), %s162_s4, 4294966784  ;;  %s171_s3 = scalar_lea.sflag [#allocation6], %s1055_s30  ;;  %s1066_s29 = scalar_lea.vmem [#allocation5], %s650_s24 }
  0x4d   : > { %852 = dma.done.wait (%p1446_p6), %s171_s3, 512  }
  0x4e   : > { %854 = vsyncadd (%p1446_p6), %s171_s3, 4294966784  ;;  %v1073_v0 = vld [vmem:[%s1059_s26] sm:$0x1]  ;;  %v1076_v1 = vld [vmem:[%s1059_s26 + $0x1] sm:$0x1]  ;;  %v415_v58 = vlaneseq  ;;  %vm422_vm1 = vcmask 1043456  }
  0x4f   : > { %v1079_v2 = vld [vmem:[%s1059_s26 + $0x2] sm:$0x1]  ;;  %v1082_v3 = vld [vmem:[%s1059_s26 + $0x3] sm:$0x1]  ;;  %v1085_v4 = vld [vmem:[%s1066_s29] sm:$0x1] }
  0x50   : > { %v1088_v5 = vld [vmem:[%s1066_s29 + $0x1] sm:$0x1]  ;;  %v1091_v6 = vld [vmem:[%s1066_s29 + $0x2] sm:$0x1]  ;;  %v1094_v7 = vld [vmem:[%s1066_s29 + $0x3] sm:$0x1] }
  0x51   : > { %v208_v8 = vmul.f32 0.5, %v1079_v2  ;;  %v211_v9 = vmul.f32 0.5, %v1082_v3  ;;  %v214_v10 = vmul.f32 0.5, %v1091_v6  ;;  %v217_v11 = vmul.f32 0.5, %v1094_v7  ;;  %v1105_v16 = vld [vmem:[%s1059_s26 + $0x7] sm:$0x1] }
  0x52   : > { %v1108_v17 = vld [vmem:[%s1059_s26 + $0x8] sm:$0x1]  ;;  %v1115_v24 = vld [vmem:[%s1059_s26 + $0x5] sm:$0x1]  ;;  %v248_v25 = vmul.f32 0.5, %v1105_v16  ;;  %vm501_vm7 = vcmask 1040384  }
  0x53   : > { %v209_v12 = vsub.f32 %v1073_v0, %v208_v8  ;;  %v210_v13 = vadd.f32 %v208_v8, %v1073_v0  ;;  %v212_v14 = vsub.f32 %v1076_v1, %v211_v9  ;;  %v213_v15 = vadd.f32 %v211_v9, %v1076_v1  ;;  %v1120_v31 = vld [vmem:[%s1059_s26 + $0x6] sm:$0x1]  ;;  %v1123_v32 = vld [vmem:[%s1066_s29 + $0x7] sm:$0x1]  ;;  %v1126_v33 = vld [vmem:[%s1066_s29 + $0x8] sm:$0x1] }
  0x54   : > { %v215_v18 = vsub.f32 %v1085_v4, %v214_v10  ;;  %v216_v19 = vadd.f32 %v214_v10, %v1085_v4  ;;  %v218_v20 = vsub.f32 %v1088_v5, %v217_v11  ;;  %v219_v21 = vadd.f32 %v217_v11, %v1088_v5  ;;  %v1129_v39 = vld [vmem:[%s1066_s29 + $0x5] sm:$0x1]  ;;  %v1132_v40 = vld [vmem:[%s1066_s29 + $0x6] sm:$0x1]  ;;  %s652_s20 = sshll.u32 %s1055_s30, 3  ;;  %s663_s5 = sshll.u32 %s918_s13, 7 }
  0x55   : > { %v229_v22 = vsub.f32 %v210_v13, %v209_v12  ;;  %v230_v23 = vsub.f32 %v213_v15, %v212_v14  ;;  %v251_v26 = vmul.f32 0.5, %v1108_v17  ;;  %v249_v41 = vsub.f32 %v1115_v24, %v248_v25  ;;  %s199_s6 = scalar_lea.vmem [#allocation7], %s652_s20  ;;  %s547_s28 = scalar_lea.hbm %s1436_s2, %s663_s5 }
  0x56   : > { %v220_v27 = vmin.f32 %v210_v13, %v216_v19  ;;  %v221_v28 = vmax.f32 %v209_v12, %v215_v18  ;;  %v224_v29 = vmin.f32 %v213_v15, %v219_v21  ;;  %v225_v30 = vmax.f32 %v212_v14, %v218_v20  ;;  %s549_s14 = sshll.u32 %s199_s6, 4  ;;  %s536_s27 = scalar_lea.sflag [#allocation4], %s1055_s30  ;;  %s550_s14 = int_to_ptr.vmem [resolvable:$true] %s549_s14 }
  0x57   : > { %v231_v34 = vmul.f32 %v230_v23, %v229_v22  ;;  %v232_v35 = vsub.f32 %v216_v19, %v215_v18  ;;  %v233_v36 = vsub.f32 %v219_v21, %v218_v20  ;;  %v250_v42 = vadd.f32 %v248_v25, %v1115_v24  ;;  %s805_s7 = scalar_lea.vmem %s550_s14, 128  ;;  %p1449_p2 = scmp.ne.s32.totalorder %s1441_s21, 0 }
  0x58   : > { %v222_v37 = vsub.f32 %v220_v27, %v221_v28  ;;  %v226_v38 = vsub.f32 %v224_v29, %v225_v30  ;;  %v252_v44 = vsub.f32 %v1120_v31, %v251_v26  ;;  %v254_v45 = vmul.f32 0.5, %v1123_v32  ;;  %p806_p13 = scmp.ne.s32.totalorder %s550_s14, %s805_s7  ;;  %s881_s23 = smov [#allocation7]  }
  0x59   : > { %v234_v43 = vmul.f32 %v233_v36, %v232_v35  ;;  %v257_v46 = vmul.f32 0.5, %v1126_v33  ;;  %v253_v49 = vadd.f32 %v251_v26, %v1120_v31  ;;  %v269_v50 = vsub.f32 %v250_v42, %v249_v41  ;;  %s809_s25 = sshll.u32 %s881_s23, 4  ;;  %s810_s25 = int_to_ptr.vmem [resolvable:$false] %s809_s25 }
  0x5a   : > { %v223_v47 = vmax.f32 %v222_v37, 0.0  ;;  %v227_v48 = vmax.f32 %v226_v38, 0.0  ;;  %v255_v52 = vsub.f32 %v1129_v39, %v254_v45  ;;  %v256_v53 = vadd.f32 %v254_v45, %v1129_v39  ;;  %p807_p12 = pnand %p806_p13, %p1449_p2  ;;  %s811_s13 = scalar_lea.vmem %s810_s25, 256 }
  0x5b   : > { %v235_v51 = vadd.f32 %v234_v43, %v231_v34  ;;  %v258_v54 = vsub.f32 %v1132_v40, %v257_v46  ;;  %v259_v56 = vadd.f32 %v257_v46, %v1132_v40  ;;  %v270_v57 = vsub.f32 %v253_v49, %v252_v44  ;;  %v283_v34 = vld [vmem:[%s1059_s26 + $0x4] sm:$0x1]  ;;  %v1233_v46 = vld [vmem:[%s1066_s29 + $0x1a] sm:$0xf]  ;;  %p812_p10 = scmp.lt.s32.totalorder %s550_s14, %s810_s25  ;;  %p813_p1 = scmp.lt.s32.totalorder %s811_s13, %s805_s7 }
  0x5c   : > { %v1143_v55 = vmul.f32 %v227_v48, %v223_v47  ;;  %v260_v59 = vmin.f32 %v250_v42, %v256_v53  ;;  %v261_v60 = vmax.f32 %v249_v41, %v255_v52  ;;  %v272_v62 = vsub.f32 %v256_v53, %v255_v52  ;;  %v1240_v47 = vld [vmem:[%s1059_s26 + $0x12] sm:$0xff]  ;;  %v1243_v48 = vld [vmem:[%s1066_s29 + $0xa] sm:$0xff]  ;;  %p808_p7 = pneg %p807_p12 }
  0x5d   : > { %v265_v61 = vmax.f32 %v252_v44, %v258_v54  ;;  %v264_v8 = vmin.f32 %v253_v49, %v259_v56  ;;  %v271_v9 = vmul.f32 %v270_v57, %v269_v50  ;;  %v273_v10 = vsub.f32 %v259_v56, %v258_v54  ;;  %v1246_v49 = vld [vmem:[%s1066_s29 + $0x12] sm:$0xff]  ;;  %p814_p3 = por %p813_p1, %p812_p10 }
  0x5e   : > { %v236_v63 = vsub.f32 %v235_v51, %v1143_v55  ;;  %v262_v11 = vsub.f32 %v260_v59, %v261_v60  ;;  %v1148_v14 = vmax.f32 %v1079_v2, 1e-06  ;;  %v1151_v15 = vshrl.u32 %v415_v58, 7 }
  0x5f   : > { %v266_v12 = vsub.f32 %v264_v8, %v265_v61  ;;  %v274_v13 = vmul.f32 %v273_v10, %v272_v62  ;;  %v1154_v19 = vmax.f32 %v1091_v6, 1e-06  ;;  %v1157_v20 = vmax.f32 %v1082_v3, 1e-06  ;;  %v1171_v3 = vld [vmem:[%s1066_s29 + $0x4] sm:$0x1]  ;;  %p815_p5 = pnand %p814_p3, %p808_p7 }
  0x60   : > { %v263_v18 = vmax.f32 %v262_v11, 0.0  ;;  %v237_v21 = vadd.f32 1e-06, %v236_v63  ;;  %v292_v25 = vsub.f32 %v1073_v0, %v1085_v4  ;;  %v294_v2 = vsub.f32 %v1076_v1, %v1088_v5 }
  0x61   : > { %v267_v22 = vmax.f32 %v266_v12, 0.0  ;;  %v275_v23 = vadd.f32 %v274_v13, %v271_v9  ;;  %721 = vrsqrt.f32 %v1148_v14  ;;  %v1168_v6 = vadd.s32 8, %v1151_v15 }
  0x62   : > { %723 = vrsqrt.f32 %v1154_v19  ;;  %vm289_vm0 = vcmp.eq.f32.partialorder %v1171_v3, 0.0  ;;  %v1177_v1 = vmax.f32 %v1094_v7, 1e-06  ;;  %v293_v4 = vmul.f32 %v292_v25, %v292_v25 }
  0x63   : > { %v1164_v26 = vmul.f32 %v267_v22, %v263_v18  ;;  %725 = vrsqrt.f32 %v1157_v20  ;;  %v295_v5 = vmul.f32 %v294_v2, %v294_v2  ;;  %v1180_v27 = vadd.s32 16, %v1151_v15 }
  0x64   : > { %727 = vrcp.f32 %v237_v21  ;;  %v419_v28 = vcvt.s32.f32 %v1151_v15  ;;  %vm284_vm2 = vcmp.gt.f32.partialorder %v1171_v3, 0.0  ;;  %v420_v30 = vcvt.s32.f32 %v1168_v6 }
  0x65   : > { %v276_v0 = vsub.f32 %v275_v23, %v1164_v26  ;;  %729 = vrsqrt.f32 %v1177_v1  ;;  %v880_v35 = vmov 0.0   ;;  %vm300_vm3 = vcmp.eq.f32.partialorder %v1148_v14, inf }
  0x66   : > { %v655_v7 = vsel %vm289_vm0, 1.0, %v880_v35  ;;  %vm302_vm4 = vcmp.eq.f32.partialorder %v1148_v14, 0.0  ;;  %v303_v36 = vand.u32 2147483648, %v1148_v14  ;;  %vm308_vm5 = vcmp.eq.f32.partialorder %v1154_v19, inf }
  0x67   : > { %v277_v29 = vadd.f32 1e-06, %v276_v0  ;;  %vm310_vm6 = vcmp.eq.f32.partialorder %v1154_v19, 0.0  ;;  %v1194_v37 = vmax.f32 %v1105_v16, 1e-06  ;;  %v1196_v38 = vadd.f32 %v295_v5, %v293_v4 }
  0x68   : > { %v1199_v41 = vmax.f32 %v1123_v32, 1e-06  ;;  %v1202_v42 = vmax.f32 %v1108_v17, 1e-06  ;;  %v1205_v43 = vmax.f32 %v1126_v33, 1e-06  ;;  %v336_v44 = vsub.f32 %v283_v34, %v1171_v3 }
  0x69   : > { %731 = vrcp.f32 %v277_v29  ;;  %v356_v45 = vsub.f32 %v1115_v24, %v1129_v39  ;;  %v358_v16 = vsub.f32 %v1120_v31, %v1132_v40  ;;  %v311_v32 = vand.u32 2147483648, %v1154_v19  ;;  %v1217_v17 = vld [vmem:[%s1066_s29 + $0x9] sm:$0x1]  ;;  %v1221_v24 = vld [vmem:[%s1059_s26 + $0xa] sm:$0xff]  ;;  %v1230_v40 = vld [vmem:[%s1059_s26 + $0x1a] sm:$0xf] }
  0x6a   : > { %733 = vrsqrt.f32 %v1194_v37  ;;  %vm319_vm8 = vcmp.eq.f32.partialorder %v1157_v20, inf  ;;  %vm321_vm9 = vcmp.eq.f32.partialorder %v1157_v20, 0.0  ;;  %v322_v31 = vand.u32 2147483648, %v1157_v20 }
  0x6b   : > { %735 = vrsqrt.f32 %v1199_v41  ;;  %v1224_v33 = vmul.f32 0.25, %v655_v7  ;;  %v1226_v39 = vmul.f32 %v283_v34, %v283_v34  ;;  %vm327_vm10 = vcmp.eq.f32.partialorder %v1177_v1, inf }
  0x6c   : > { %737 = vrsqrt.f32 %v1202_v42  ;;  %vm329_vm11 = vcmp.eq.f32.partialorder %v1177_v1, 0.0  ;;  %vm347_vm12 = vcmp.gt.f32.partialorder %v1217_v17, 0.0  ;;  %v330_v51 = vand.u32 2147483648, %v1177_v1 }
  0x6d   : > { %739 = vrsqrt.f32 %v1205_v43  ;;  %v1249_v52 = vmul.f32 %v336_v44, %v336_v44  ;;  %v1251_v53 = vmul.f32 %v356_v45, %v356_v45  ;;  %v1253_v54 = vmul.f32 %v358_v16, %v358_v16  ;;  %vm1259_vm13 = vmor %vm284_vm2, %vm347_vm12 }
  0x6e   : > { %v722_v50 = vpop.eup %721  ;;  %vm364_vm14 = vcmp.eq.f32.partialorder %v1194_v37, inf  ;;  %v367_v60 = vand.u32 2147483648, %v1194_v37  ;;  %v423_v61 = vsel %vm422_vm1, %v1233_v46, -inf  ;;  %vm366_vm15 = vcmp.eq.f32.partialorder %v1194_v37, 0.0 }
  0x6f   : > { %v724_v57 = vpop.eup %723  ;;  %v299_v59 = vmul.f32 %v722_v50, %v1148_v14  ;;  %v424_v8 = vmax.f32 %v1243_v48, %v1246_v49  ;;  %v456_v9 = vsel %vm422_vm1, %v1230_v40, -inf  ;;  %v457_v10 = vmax.f32 %v1221_v24, %v1240_v47 }
  0x70   : > { %v726_v62 = vpop.eup %725  ;;  %v307_v63 = vmul.f32 %v724_v57, %v1154_v19  ;;  %vm372_vm0 = vcmp.eq.f32.partialorder %v1199_v41, inf  ;;  %v1284_v18 = vsel %vm1259_vm13, 1.0, %v880_v35  ;;  %v375_v44 = vand.u32 2147483648, %v1199_v41 }
  0x71   : > { %v728_v11 = vpop.eup %727  ;;  %v301_v12 = vsel %vm300_vm3, %v1148_v14, %v299_v59  ;;  %v318_v13 = vmul.f32 %v726_v62, %v1157_v20  ;;  %v425_v23 = vmax.f32 %v424_v8, %v423_v61  ;;  %v458_v25 = vmax.f32 %v457_v10, %v456_v9 }
  0x72   : > { %v304_v21 = vsel %vm302_vm4, %v303_v36, %v301_v12  ;;  %v309_v22 = vsel %vm308_vm5, %v1154_v19, %v307_v63  ;;  %v730_v2 = vpop.eup %729  ;;  %vm374_vm3 = vcmp.eq.f32.partialorder %v1199_v41, 0.0  ;;  %v509_v14 = vsel %vm501_vm7, %v1284_v18, 0.0 }
  0x73   : > { %v312_v0 = vsel %vm310_vm6, %v311_v32, %v309_v22  ;;  %v320_v4 = vsel %vm319_vm8, %v1157_v20, %v318_v13  ;;  %v1300_v5 = vmul.f32 %v728_v11, %v1143_v55  ;;  %v326_v34 = vmul.f32 %v730_v2, %v1177_v1  ;;  %510 = vadd.xlane.f32.xlu1 %v509_v14  ;;  %v346_v13 = vld [vmem:[%s1059_s26 + $0x9] sm:$0x1] }
  0x74   : > { %v313_v29 = vsub.f32 %v304_v21, %v312_v0  ;;  %vm353_vm4 = vcmp.eq.f32.partialorder %v1217_v17, 0.0  ;;  %v426_v7 = vrot.slane %v425_v23, 4  ;;  %v323_v36 = vsel %vm321_vm9, %v322_v31, %v320_v4 }
  0x75   : > { %vm383_vm5 = vcmp.eq.f32.partialorder %v1202_v42, inf  ;;  %v459_v45 = vrot.slane %v458_v25, 4  ;;  %v328_v32 = vsel %vm327_vm10, %v1177_v1, %v326_v34  ;;  %vm385_vm6 = vcmp.eq.f32.partialorder %v1202_v42, 0.0 }
  0x76   : > { %v732_v19 = vpop.eup %731  ;;  %v314_v55 = vmul.f32 %v313_v29, %v313_v29  ;;  %v427_v50 = vmax.f32 %v425_v23, %v426_v7  ;;  %v331_v57 = vsel %vm329_vm11, %v330_v51, %v328_v32  ;;  %v386_v20 = vand.u32 2147483648, %v1202_v42 }
  0x77   : > { %v279_v16 = vmul.f32 %v732_v19, %v1164_v26  ;;  %v734_v56 = vpop.eup %733  ;;  %v460_v31 = vmax.f32 %v458_v25, %v459_v45  ;;  %v332_v61 = vsub.f32 %v323_v36, %v331_v57  ;;  %vm391_vm9 = vcmp.eq.f32.partialorder %v1205_v43, inf }
  0x78   : > { %v736_v59 = vpop.eup %735  ;;  %v315_v26 = vadd.f32 %v314_v55, %v1196_v38  ;;  %v363_v62 = vmul.f32 %v734_v56, %v1194_v37  ;;  %v394_v1 = vand.u32 2147483648, %v1205_v43  ;;  %v428_v51 = vrot.slane %v427_v50, 2 }
  0x79   : > { %vm280_vm8 = vcmp.gt.f32.partialorder %v279_v16, %v1300_v5  ;;  %v738_v63 = vpop.eup %737  ;;  %v371_v8 = vmul.f32 %v736_v59, %v1199_v41  ;;  %v333_v10 = vmul.f32 %v332_v61, %v332_v61  ;;  %v461_v38 = vrot.slane %v460_v31, 2 }
  0x7a   : > { %v740_v9 = vpop.eup %739  ;;  %v365_v11 = vsel %vm364_vm14, %v1194_v37, %v363_v62  ;;  %v382_v12 = vmul.f32 %v738_v63, %v1202_v42  ;;  %vm653_vm10 = vmneg %vm280_vm8  ;;  %vm393_vm11 = vcmp.eq.f32.partialorder %v1205_v43, 0.0  ;;  %v360_v2 = vadd.f32 %v1253_v54, %v1251_v53 }
  0x7b   : > { %v368_v21 = vsel %vm366_vm15, %v367_v60, %v365_v11  ;;  %v373_v22 = vsel %vm372_vm0, %v1199_v41, %v371_v8  ;;  %v390_v23 = vmul.f32 %v740_v9, %v1205_v43  ;;  %v334_v25 = vadd.f32 %v333_v10, %v315_v26  ;;  %vm286_vm13 = vmand %vm653_vm10, %vm284_vm2 }
  0x7c   : > { %v376_v0 = vsel %vm374_vm3, %v375_v44, %v373_v22  ;;  %v384_v37 = vsel %vm383_vm5, %v1202_v42, %v382_v12  ;;  %v429_v29 = vmax.f32 %v427_v50, %v428_v51  ;;  %v400_v41 = vsub.f32 %v346_v13, %v1217_v17  ;;  %vm350_vm2 = vmand %vm280_vm8, %vm347_vm12 }
  0x7d   : > { %v377_v60 = vsub.f32 %v368_v21, %v376_v0  ;;  %v387_v4 = vsel %vm385_vm6, %v386_v20, %v384_v37  ;;  %v392_v14 = vsel %vm391_vm9, %v1205_v43, %v390_v23  ;;  %v335_v53 = vmul.f32 10.0, %v334_v25 }
  0x7e   : > { %v395_v54 = vsel %vm393_vm11, %v394_v1, %v392_v14  ;;  %v462_v34 = vmax.f32 %v460_v31, %v461_v38  ;;  %v657_v7 = vsel %vm353_vm4, 1.0, %v880_v35  ;;  %v430_v36 = vrot.slane %v429_v29, 1 }
  0x7f   : > { %v378_v19 = vmul.f32 %v377_v60, %v377_v60  ;;  %v396_v42 = vsub.f32 %v387_v4, %v395_v54  ;;  %v338_v44 = vadd.f32 %v1249_v52, %v335_v53  ;;  %v342_v43 = vmul.f32 %v1226_v39, %v1224_v33 }
  0x80   : > { %v421_v3 = vcvt.s32.f32 %v1180_v27  ;;  %v463_v45 = vrot.slane %v462_v34, 1  ;;  %v654_v55 = vsel %vm286_vm13, 1.0, %v880_v35  ;;  %v431_v56 = vmax.f32 %v429_v29, %v430_v36 }
  0x81   : > { %v379_v32 = vadd.f32 %v378_v19, %v360_v2  ;;  %v397_v50 = vmul.f32 %v396_v42, %v396_v42  ;;  %v401_v57 = vmul.f32 %v400_v41, %v400_v41  ;;  %v404_v20 = vmul.f32 0.25, %v657_v7 }
  0x82   : > { %v405_v31 = vmul.f32 %v346_v13, %v346_v13  ;;  %v1359_v59 = vmax.f32 %v462_v34, %v463_v45  ;;  %vm432_vm14 = vcmp.eq.f32.partialorder %v1243_v48, %v431_v56  ;;  %vm433_vm15 = vcmp.eq.f32.partialorder %v1246_v49, %v431_v56 }
  0x83   : > { %v398_v52 = vadd.f32 %v397_v50, %v379_v32  ;;  %vm434_vm0 = vcmp.eq.f32.partialorder %v1233_v46, %v431_v56  ;;  %v339_v27 = vmul.f32 %v654_v55, %v338_v44  ;;  %v435_v33 = vsel %vm432_vm14, %v419_v28, 20.0 }
  0x84   : > { %v436_v39 = vsel %vm433_vm15, %v420_v30, 20.0  ;;  %v437_v26 = vsel %vm434_vm0, %v421_v3, 20.0  ;;  %v465_v16 = vsub.f32 %v1221_v24, %v1359_v59  ;;  %v656_v48 = vsel %vm350_vm2, 1.0, %v880_v35 }
  0x85   : > { %v399_v61 = vmul.f32 10.0, %v398_v52  ;;  %v438_v17 = vsel %vm422_vm1, %v437_v26, inf  ;;  %v439_v5 = vmin.f32 %v435_v33, %v436_v39  ;;  %v466_v46 = vsub.f32 %v1240_v47, %v1359_v59 }
  0x86   : > { %v467_v49 = vsub.f32 %v1230_v40, %v1359_v59  ;;  %v406_v63 = vmul.f32 %v405_v31, %v404_v20  ;;  %v468_v1 = vmul.f32 1.442695, %v465_v16  ;;  %v343_v10 = vadd.f32 %v342_v43, %v339_v27 }
  0x87   : > { %v402_v62 = vadd.f32 %v401_v57, %v399_v61  ;;  %v440_v8 = vmin.f32 %v439_v5, %v438_v17  ;;  %v470_v51 = vmul.f32 1.442695, %v466_v46  ;;  %v513_v33 = vand.u32 127, %v415_v58 }
  0x88   : > { %v472_v9 = vmul.f32 1.442695, %v467_v49  ;;  %741 = vpow2.f32 %v468_v1  ;;  %v517_v39 = vsub.s32 0, %v1151_v15 }
  0x89   : > { %v403_v11 = vmul.f32 %v656_v48, %v402_v62  ;;  %v441_v12 = vrot.slane %v440_v8, 4  ;;  %743 = vpow2.f32 %v470_v51  ;;  %vm514_vm5 = vcmp.eq.s32.totalorder %v513_v33, 0 }
  0x8a   : > { %745 = vpow2.f32 %v472_v9  ;;  %vm520_vm6 = vcmp.eq.s32.totalorder %v513_v33, 1 }
  0x8b   : > { %v407_v38 = vadd.f32 %v406_v63, %v403_v11  ;;  %v442_v13 = vmin.f32 %v440_v8, %v441_v12 }
  0x8d   : > { %v408_v21 = vadd.f32 %v407_v38, %v343_v10  ;;  %v443_v22 = vrot.slane %v442_v13, 2 }
  0x8f   : > { %v502_v23 = vsel %vm501_vm7, %v408_v21, 0.0  ;;  %v444_v25 = vmin.f32 %v442_v13, %v443_v22 }
  0x90   : > { %503 = vadd.xlane.f32.xlu0 %v502_v23 }
  0x91   : > { %v445_v2 = vrot.slane %v444_v25, 1 }
  0x93   : > { %v446_v0 = vmin.f32 %v444_v25, %v445_v2 }
  0x95   : > { %vm447_vm12 = vcmp.eq.f32.partialorder %v419_v28, %v446_v0  ;;  %vm448_vm3 = vcmp.eq.f32.partialorder %v420_v30, %v446_v0  ;;  %vm449_vm4 = vcmp.eq.f32.partialorder %v421_v3, %v446_v0  ;;  %v742_v37 = vpop.eup %741 }
  0x96   : > { %v658_v60 = vsel %vm447_vm12, 1.0, %v880_v35  ;;  %v659_v4 = vsel %vm448_vm3, 1.0, %v880_v35  ;;  %v660_v14 = vsel %vm449_vm4, 1.0, %v880_v35  ;;  %v744_v29 = vpop.eup %743 }
  0x97   : > { %v486_v53 = vmul.f32 %v658_v60, %v1221_v24  ;;  %v487_v54 = vmul.f32 %v659_v4, %v1240_v47  ;;  %v488_v41 = vmul.f32 %v660_v14, %v1230_v40  ;;  %v746_v34 = vpop.eup %745  ;;  %v474_v28 = vadd.f32 %v744_v29, %v742_v37 }
  0x98   : > { %v475_v6 = vsel %vm422_vm1, %v746_v34, 0.0 }
  0x99   : > { %v476_v30 = vadd.f32 %v475_v6, %v474_v28  ;;  %v489_v7 = vadd.f32 %v487_v54, %v486_v53  ;;  %v490_v19 = vsel %vm422_vm1, %v488_v41, 0.0  ;;  %vm527_vm1 = vcmp.eq.s32.totalorder %v513_v33, 2 }
  0x9b   : > { %v477_v42 = vrot.slane %v476_v30, 4  ;;  %v491_v44 = vadd.f32 %v490_v19, %v489_v7 }
  0x9d   : > { %v478_v36 = vadd.f32 %v477_v42, %v476_v30  ;;  %v492_v3 = vrot.slane %v491_v44, 4 }
  0x9f   : > { %v479_v43 = vrot.slane %v478_v36, 2  ;;  %v493_v55 = vadd.f32 %v492_v3, %v491_v44 }
  0xa1   : > { %v480_v35 = vadd.f32 %v479_v43, %v478_v36  ;;  %v494_v47 = vrot.slane %v493_v55, 2 }
  0xa3   : > { %v481_v45 = vrot.slane %v480_v35, 1  ;;  %v495_v40 = vadd.f32 %v494_v47, %v493_v55 }
  0xa5   : > { %v482_v24 = vadd.f32 %v481_v45, %v480_v35  ;;  %v496_v32 = vrot.slane %v495_v40, 1 }
  0xa7   : > { %747 = vlog2.f32 %v482_v24  ;;  %v497_v57 = vadd.f32 %v496_v32, %v495_v40 }
  0xb4   : > { %v748_v50 = vpop.eup %747 }
  0xb5   : > { %v484_v56 = vmul.f32 0.6931472, %v748_v50 }
  0xb7   : > { %v485_v20 = vadd.f32 %v484_v56, %v1359_v59 }
  0xb9   : > { %v498_v31 = vsub.f32 %v485_v20, %v497_v57 }
  0xbb   : > { %v505_v52 = vmul.f32 %v1284_v18, %v498_v31 }
  0xbd   : > { %v506_v27 = vsel %vm501_vm7, %v505_v52, 0.0 }
  0xbe   : > { %507 = vadd.xlane.f32.xlu0 %v506_v27 }
  0xfc   : > { %v511_v26 = vpop.xlane.xlu1 %510 }
  0xfd   : > { %v531_v61 = vrot.slane %v511_v26, %v517_v39 }
  0xff   : > { %v532_v17 = vsel %vm527_vm1, %v531_v61, 0.0 }
 0x119   : > { %v504_v5 = vpop.xlane.xlu0 %503 }
 0x11a   : > { %v518_v16 = vrot.slane %v504_v5, %v517_v39 }
 0x11c   : > { %v519_v59 = vsel %vm514_vm5, %v518_v16, 0.0 }
 0x147   : > { %v508_v18 = vpop.xlane.xlu0 %507 }
 0x148   : > { %v524_v48 = vrot.slane %v508_v18, %v517_v39 }
 0x14a   : > { %v525_v46 = vsel %vm520_vm6, %v524_v48, 0.0 }
 0x14b   : > { %v526_v58 = vadd.f32 %v525_v46, %v519_v59 }
 0x14d   : > { %v533_v15 = vadd.f32 %v532_v17, %v526_v58 }
 0x14f   : > { %534 = vst [vmem:[%s199_s6] sm:$0xff] %v533_v15 }
 0x150   : > { %818 = shalt.err (!%p815_p5)
}
 0x151   : > { %s819_s8 = scalar_lea.hbm %s547_s28, 128  ;;  %s823_s24 = scalar_lea.hbm %s1436_s2, 256 }
 0x152   : > { %p820_p9 = scmp.ne.s32.totalorder %s547_s28, %s819_s8  ;;  %p824_p4 = scmp.lt.s32.totalorder %s547_s28, %s1436_s2 }
 0x153   : > { %p825_p8 = scmp.lt.s32.totalorder %s823_s24, %s819_s8 }
 0x154   : > { %p821_p11 = pnand %p820_p9, %p1449_p2 }
 0x155   : > { %p826_p6 = por %p825_p8, %p824_p4 }
 0x156   : > { %p822_p0 = pneg %p821_p11 }
 0x158   : > { %p827_p13 = pnand %p826_p6, %p822_p0 }
 0x15a   : > { %830 = shalt.err (!%p827_p13)
}
 0x15b   : > { %670 = dma.vmem_to_hbm [thread:$0]  (%p1449_p2), %s550_s14, 128, %s547_s28, %s536_s27  }
 0x15c PF: > { %s561_s3 = sand.u32 1, %s861_s9   ;;  %p1450_p12 = scmp.ne.s32.totalorder %s1442_s22, 0 }
 0x15d   : > { %p1451_p7 = scmp.ge.s32.totalorder %s873_s12, 2  ;;  %s562_s29 = scalar_lea.sflag [#allocation4], %s561_s3 }
 0x15f   : > { %p680_p10 = pnand %p1451_p7, %p1450_p12 }
 0x161   : > { %p681_p1 = pneg %p680_p10 }
 0x163   : > { %856 = dma.done.wait (%p681_p1), %s562_s29, 128  }
 0x164   : > { %858 = vsyncadd (%p681_p1), %s562_s29, 4294967168  ;;  %p18_p3 = scmp.ge.s32.totalorder %s922_s15, 4   ;;  %s1452_s9 = smov %s865_s10 }
 0x165   : > { %s1453_s10 = smov %s869_s11  ;;  %s1454_s11 = smov %s934_s18 }
 0x166   : > { %s1455_s12 = smov %s922_s15  ;;  %20 = sbr.rel (!%p18_p3) target bundleno = 7 (0x7), region = 86 }
 0x16b   :  { %567 = vsyncpa [#allocation3], 1 }
 0x16c   :  { %569 = vsyncpa [#allocation3 + $0x1], 1 }
 0x16d   :  { %570 = vsyncpa [#allocation6], 1 }
 0x16e   :  { %572 = vsyncpa [#allocation6 + $0x1], 1 }
 0x16f   :  { %573 = vsyncpa [#allocation4], 1 }
 0x170   :  { %575 = vsyncpa [#allocation4 + $0x1], 1 }

</bundles_post_ra>
